<compile_context>
chip_gen: v6e
topology: v6e:2x2x1
jax: 0.10.0
libtpu: 0.0.40
codegen_flags: <defaults>
</compile_context>

<pallas_src>
import functools

import jax
import jax.numpy as jnp
from jax import lax
from jax.experimental import pallas as pl
from jax.experimental.pallas import tpu as pltpu

IN_FEATURES = 2916
OUT_FEATURES = 1

_DEFAULT_TB = 1024                      # batch rows per grid step (multiple of 8)
_ROW_CHUNK = 256                        # rows reduced per inner-loop step
_VMEM_LIMIT_BYTES = 48 * 1024 * 1024    # < v7x 64 MiB physical; >> v5e 16 MiB scoped default


def _round_up(x, m):
    return ((x + m - 1) // m) * m


def _linear_kernel(x_ref, w_ref, b_ref, o_ref, *, row_chunk):
    """out[i, 0] = sum_k x[i, k] * w[0, k] + b   (N == 1 GEMV, VPU + XLU path).

    x_ref: (TB, K) VMEM (streamed)    w_ref: (1, K) VMEM (resident)
    b_ref: (1, 1)  SMEM scalar        o_ref: (TB, 1) VMEM
    """
    w = w_ref[...].astype(jnp.float32)            # (1, K), broadcasts over rows
    bias = b_ref[0, 0].astype(jnp.float32)

    tb = x_ref.shape[0]
    n_chunks = tb // row_chunk                    # static trip count

    def body(r, carry):
        start = pl.multiple_of(r * row_chunk, row_chunk)
        xr = x_ref[pl.ds(start, row_chunk), :].astype(jnp.float32)   # (RC, K)
        # VPU broadcast-multiply + XLU cross-lane reduce; f32 accumulation,
        # cast only at the store. Chunking bounds the (RC, K) temp to ~3 MiB.
        s = jnp.sum(xr * w, axis=-1, keepdims=True)                  # (RC, 1)
        o_ref[pl.ds(start, row_chunk), :] = (s + bias).astype(o_ref.dtype)
        return carry

    lax.fori_loop(0, n_chunks, body, 0, unroll=False)


def regressor_forward(x, weight, bias, *, tb=_DEFAULT_TB):
    """Equivalent of Regressor.forward.

    x:      (B, 2916)
    weight: (1, 2916)  (PyTorch Linear weight layout — NOT transposed)
    bias:   (1,)
    returns (B, 1) in x.dtype
    """
    B, K = x.shape
    N, Kw = weight.shape
    assert Kw == K
    assert N == OUT_FEATURES == 1, "kernel is specialized for nn.Linear(in, 1)"

    # Pad the batch only to a sublane multiple (<= 7 extra rows); never to TB.
    Bp = _round_up(max(B, 1), 8)
    if Bp != B:
        x = jnp.pad(x, ((0, Bp - B), (0, 0)))

    # Batch tile: multiple of 8, capped at `tb`, sized so the grid has >= 2
    # steps for Bp >= 16 (lets "parallel" shard the batch across both v7x TCs).
    TB = max(8, min(tb, _round_up(pl.cdiv(Bp, 2), 8)))

    # Inner row-chunk: power-of-two divisor of TB, capped at _ROW_CHUNK.
    rc = _ROW_CHUNK
    while TB % rc:
        rc //= 2

    grid = (pl.cdiv(Bp, TB),)  # ragged last block handled by Pallas write-masking

    b2d = bias.reshape(1, N).astype(jnp.float32)   # (1, 1) scalar for SMEM

    out = pl.pallas_call(
        functools.partial(_linear_kernel, row_chunk=rc),
        out_shape=jax.ShapeDtypeStruct((Bp, N), x.dtype),
        grid_spec=pl.GridSpec(
            grid=grid,
            in_specs=[
                # x: streamed, one (TB, K) tile per grid step
                pl.BlockSpec((TB, K), lambda i: (i, 0)),
                # weight: same block every step -> stays resident in VMEM
                pl.BlockSpec((1, K), lambda i: (0, 0)),
                # bias: scalar in SMEM, no VMEM tile / DMA stream
                pl.BlockSpec(memory_space=pltpu.MemorySpace.SMEM),
            ],
            out_specs=pl.BlockSpec((TB, N), lambda i: (i, 0)),
        ),
        compiler_params=pltpu.CompilerParams(
            dimension_semantics=("parallel",),
            vmem_limit_bytes=_VMEM_LIMIT_BYTES,
        ),
        cost_estimate=pl.CostEstimate(
            flops=2 * B * K,
            transcendentals=0,
            bytes_accessed=B * K * 4 + B * N * 4 + K * 4 + 4,
        ),
    )(x, weight, b2d)

    if Bp != B:
        out = out[:B]
    return out


if __name__ == "__main__":
    key = jax.random.PRNGKey(0)
    k_x, k_w, k_b, k_x2 = jax.random.split(key, 4)

    # Deterministic parameter init mimicking PyTorch Linear default:
    # uniform(-1/sqrt(fan_in), 1/sqrt(fan_in))
    bound = 1.0 / jnp.sqrt(jnp.float32(IN_FEATURES))
    weight = jax.random.uniform(
        k_w, (OUT_FEATURES, IN_FEATURES), jnp.float32, -bound, bound)
    bias = jax.random.uniform(
        k_b, (OUT_FEATURES,), jnp.float32, -bound, bound)

    # Small batch (divisible case).
    B = 8
    x = jax.random.normal(k_x, (B, IN_FEATURES), jnp.float32)
    out = jax.block_until_ready(regressor_forward(x, weight, bias))
    ref = x @ weight.T + bias
    assert out.shape == (B, OUT_FEATURES)
    assert jnp.allclose(out, ref, atol=1e-4, rtol=1e-4), "mismatch vs reference (B=8)"

    # Ragged batch (exercises the non-divisible grid / masked writeback path).
    B2 = 20
    x2 = jax.random.normal(k_x2, (B2, IN_FEATURES), jnp.float32)
    out2 = jax.block_until_ready(regressor_forward(x2, weight, bias))
    ref2 = x2 @ weight.T + bias
    assert out2.shape == (B2, OUT_FEATURES)
    assert jnp.allclose(out2, ref2, atol=1e-4, rtol=1e-4), "mismatch vs reference (B=20)"

    print("KERNEL_OK")
</pallas_src>

<mosaic_0001>
module attributes {stable_mosaic.version = 11 : i64} {
  func.func @_linear_kernel(%arg0: i32, %arg1: memref<8x2916xf32, #tpu.memory_space<vmem>>, %arg2: memref<1x2916xf32, #tpu.memory_space<vmem>>, %arg3: memref<1x1xf32, #tpu.memory_space<smem>>, %arg4: memref<8x1xf32, #tpu.memory_space<vmem>>) attributes {dimension_semantics = [#tpu.dimension_semantics<parallel>], iteration_bounds = array<i64: 1>, scalar_prefetch = 0 : i64, scratch_operands = 0 : i64, tpu.core_type = #tpu.core_type<tc>, window_params = [{transform_indices = @transform_0, window_bounds = array<i64: 8, 2916>}, {pipeline_mode = #tpu.pipeline_mode<synchronous>, transform_indices = @transform_1, window_bounds = array<i64: 1, 2916>}, {transform_indices = @transform_2, window_bounds = array<i64: 1, 1>}, {transform_indices = @transform_3, window_bounds = array<i64: 8, 1>}]} {
    %c0 = arith.constant 0 : index
    %c0_0 = arith.constant 0 : index
    %0 = vector.load %arg2[%c0, %c0_0] : memref<1x2916xf32, #tpu.memory_space<vmem>>, vector<1x2916xf32>
    %c0_1 = arith.constant 0 : index
    %c0_2 = arith.constant 0 : index
    %1 = memref.load %arg3[%c0_1, %c0_2] : memref<1x1xf32, #tpu.memory_space<smem>>
    %c0_i32 = arith.constant 0 : i32
    %c8_i32 = arith.constant 8 : i32
    %2 = arith.muli %c0_i32, %c8_i32 : i32
    %3 = tpu.assume_multiple %2, 8 : i32
    %4 = arith.index_cast %3 : i32 to index
    %c0_3 = arith.constant 0 : index
    %5 = vector.load %arg1[%4, %c0_3] : memref<8x2916xf32, #tpu.memory_space<vmem>>, vector<8x2916xf32>
    %6 = vector.broadcast %0 : vector<1x2916xf32> to vector<8x2916xf32>
    %7 = arith.mulf %5, %6 : vector<8x2916xf32>
    %cst = arith.constant dense<0.000000e+00> : vector<8xf32>
    %8 = vector.multi_reduction <add>, %7, %cst [1] : vector<8x2916xf32> to vector<8xf32>
    %9 = vector.shape_cast %8 : vector<8xf32> to vector<8x1xf32>
    %10 = vector.broadcast %1 : f32 to vector<8x1xf32>
    %11 = arith.addf %9, %10 : vector<8x1xf32>
    %12 = arith.index_cast %3 : i32 to index
    %c0_4 = arith.constant 0 : index
    %13 = vector.load %arg4[%12, %c0_4] : memref<8x1xf32, #tpu.memory_space<vmem>>, vector<8x1xf32>
    tpu.vector_store %arg4[%12, %c0_4], %11 {strides = array<i32>} : memref<8x1xf32, #tpu.memory_space<vmem>>, vector<8x1xf32>,
    %c1_i32 = arith.constant 1 : i32
    return
  }
  func.func @transform_0(%arg0: i32) -> (i32, i32) {
    %c0_i32 = arith.constant 0 : i32
    %c0_i32_0 = arith.constant 0 : i32
    return %arg0, %c0_i32 : i32, i32
  }
  func.func @transform_1(%arg0: i32) -> (i32, i32) {
    %c0_i32 = arith.constant 0 : i32
    %c0_i32_0 = arith.constant 0 : i32
    %c0_i32_1 = arith.constant 0 : i32
    return %c0_i32, %c0_i32_0 : i32, i32
  }
  func.func @transform_2(%arg0: i32) -> (i32, i32) {
    %c0_i32 = arith.constant 0 : i32
    %c0_i32_0 = arith.constant 0 : i32
    %c0_i32_1 = arith.constant 0 : i32
    return %c0_i32, %c0_i32_0 : i32, i32
  }
  func.func @transform_3(%arg0: i32) -> (i32, i32) {
    %c0_i32 = arith.constant 0 : i32
    %c0_i32_0 = arith.constant 0 : i32
    return %arg0, %c0_i32 : i32, i32
  }
}

</mosaic_0001>

<bundles_post_ra>
// kernel: tpu_custom_call.1
= control target key start
LH: loop header
LB: loop body
LE: loop exit
PB: predicated region body
PF: predicated region fallthrough
CT: control target
= control target key end

     0   :  { %9 = vsyncpa [#allocation4], 0  ;;  %s371_s0 = inlined_call_operand.hbm [shape: f32[8,2916], index: 0, kind: input, shape index: {}]   ;;  %s372_s1 = inlined_call_operand.hbm [shape: f32[1,2916], index: 1, kind: input, shape index: {}]   ;;  %s373_s2 = inlined_call_operand.<no memory space> [shape: f32[1,1], index: 2, kind: input, shape index: {}]   ;;  %s374_s3 = inlined_call_operand.vmem [shape: f32[8,1], index: 3, kind: output, shape index: {}]  }
   0x1   :  { %10 = vsyncpa [#allocation6], 0  ;;  %s292_s12 = smov [#allocation3]   ;;  %s293_s14 = smov [#allocation5]  }
   0x2   :  { %s17_s13 = sshll.u32 %s292_s12, 4  ;;  %s27_s15 = sshll.u32 %s293_s14, 4  ;;  %s18_s13 = int_to_ptr.vmem [resolvable:$true] %s17_s13  ;;  %s28_s15 = int_to_ptr.vmem [resolvable:$true] %s27_s15 }
   0x3   :  { %s256_s16 = scalar_lea.vmem %s18_s13, 2944  ;;  %p261_p1 = scmp.lt.s32.totalorder %s18_s13, %s18_s13 }
   0x4   :  { %p257_p0 = scmp.ne.s32.totalorder %s18_s13, %s256_s16  ;;  %p262_p2 = scmp.lt.s32.totalorder %s256_s16, %s256_s16 }
   0x6   :  { %p263_p3 = por %p262_p2, %p261_p1 }
   0x8   :  { %p264_p4 = pnand %p263_p3, %p257_p0 }
   0xa   :  { %267 = shalt.err (!%p264_p4)
}
   0xb   :  { %20 = dma.hbm_to_vmem [thread:$0]  %s371_s0, 2944, %s18_s13, [#allocation4]  }
   0xc   :  { %s276_s19 = scalar_lea.vmem %s28_s15, 368  ;;  %s280_s20 = scalar_lea.vmem %s28_s15, 384 }
   0xd   :  { %p277_p5 = scmp.ne.s32.totalorder %s28_s15, %s276_s19  ;;  %p281_p6 = scmp.lt.s32.totalorder %s28_s15, %s28_s15 }
   0xe   :  { %p282_p7 = scmp.lt.s32.totalorder %s280_s20, %s276_s19 }
  0x10   :  { %p283_p8 = por %p282_p7, %p281_p6 }
  0x12   :  { %p284_p9 = pnand %p283_p8, %p277_p5 }
  0x14   :  { %287 = shalt.err (!%p284_p9)
}
  0x15   :  { %30 = dma.hbm_to_vmem [thread:$0]  %s372_s1, 368, %s28_s15, [#allocation6]  }
  0x16   :  { %288 = dma.done.wait [#allocation4], 2944  }
  0x17   :  { %289 = vsyncadd [#allocation4], 4294964352 }
  0x18   :  { %290 = dma.done.wait [#allocation6], 368  }
  0x19   :  { %291 = vsyncadd [#allocation6], 4294966928  ;;  %v72_v0 = vlaneseq  ;;  %v39_v4 = vld [vmem:[#allocation5] sm:$0xff]  ;;  %v46_v9 = vld [vmem:[#allocation3] sm:$0xff]  ;;  %vm231_vm0 = vcmask 818176   ;;  %vm238_vm1 = vcmask 7168  }
  0x1a   :  { %v47_v10 = vld [vmem:[#allocation3 + $0x8] sm:$0xff]  ;;  %v48_v13 = vld [vmem:[#allocation3 + $0x10] sm:$0xff]  ;;  %v49_v18 = vld [vmem:[#allocation3 + $0x18] sm:$0xff] }
  0x1b   :  { %v320_v1 = vshrl.u32 %v72_v0, 7  ;;  %v50_v22 = vld [vmem:[#allocation3 + $0x20] sm:$0xff]  ;;  %v51_v27 = vld [vmem:[#allocation3 + $0x28] sm:$0xff]  ;;  %v52_v32 = vld [vmem:[#allocation3 + $0x30] sm:$0xff] }
  0x1c   :  { %v40_v31 = vld [vmem:[#allocation5 + $0x8] sm:$0xff]  ;;  %v53_v36 = vld [vmem:[#allocation3 + $0x38] sm:$0xff]  ;;  %v55_v44 = vld [vmem:[#allocation3 + $0x48] sm:$0xff] }
  0x1d   :  { %v323_v2 = vsub.s32 0, %v320_v1  ;;  %v326_v3 = vsub.s32 1, %v320_v1  ;;  %v329_v5 = vsub.s32 2, %v320_v1  ;;  %v334_v8 = vsub.s32 3, %v320_v1  ;;  %v54_v40 = vld [vmem:[#allocation3 + $0x40] sm:$0xff]  ;;  %v56_v48 = vld [vmem:[#allocation3 + $0x50] sm:$0xff] }
  0x1e   :  { %v338_v12 = vsub.s32 4, %v320_v1  ;;  %v342_v15 = vsub.s32 5, %v320_v1  ;;  %v346_v20 = vsub.s32 6, %v320_v1  ;;  %v102_v24 = vsub.s32 7, %v320_v1  ;;  %v57_v52 = vld [vmem:[#allocation3 + $0x58] sm:$0xff]  ;;  %v58_v56 = vld [vmem:[#allocation3 + $0x60] sm:$0xff] }
  0x1f   :  { %v75_v6 = vrot.slane %v39_v4, %v323_v2  ;;  %v79_v7 = vrot.slane %v39_v4, %v326_v3  ;;  %v83_v11 = vrot.slane %v39_v4, %v329_v5  ;;  %v87_v14 = vrot.slane %v39_v4, %v334_v8  ;;  %v59_v60 = vld [vmem:[#allocation3 + $0x68] sm:$0xff]  ;;  %v60_v1 = vld [vmem:[#allocation3 + $0x70] sm:$0xff] }
  0x20   :  { %v91_v19 = vrot.slane %v39_v4, %v338_v12  ;;  %v95_v23 = vrot.slane %v39_v4, %v342_v15  ;;  %v99_v28 = vrot.slane %v39_v4, %v346_v20  ;;  %v103_v33 = vrot.slane %v39_v4, %v102_v24  ;;  %v41_v0 = vld [vmem:[#allocation5 + $0x10] sm:$0x7f] }
  0x21   :  { %v187_v16 = vmul.f32 %v75_v6, %v46_v9  ;;  %v188_v17 = vmul.f32 %v79_v7, %v47_v10  ;;  %v189_v21 = vmul.f32 %v83_v11, %v48_v13  ;;  %v190_v25 = vmul.f32 %v87_v14, %v49_v18  ;;  %v61_v9 = vld [vmem:[#allocation3 + $0x78] sm:$0xff]  ;;  %v62_v14 = vld [vmem:[#allocation3 + $0x80] sm:$0xff] }
  0x22   :  { %v191_v29 = vmul.f32 %v91_v19, %v50_v22  ;;  %v192_v34 = vmul.f32 %v95_v23, %v51_v27  ;;  %v107_v37 = vrot.slane %v40_v31, %v323_v2  ;;  %v193_v38 = vmul.f32 %v99_v28, %v52_v32  ;;  %v63_v19 = vld [vmem:[#allocation3 + $0x88] sm:$0xff]  ;;  %v65_v28 = vld [vmem:[#allocation3 + $0x98] sm:$0xff]  ;;  %v68_v32 = vld [vmem:[#allocation3 + $0xb0] sm:$0xff] }
  0x23   :  { %v210_v26 = vadd.f32 %v188_v17, %v187_v16  ;;  %v111_v41 = vrot.slane %v40_v31, %v326_v3  ;;  %v194_v42 = vmul.f32 %v103_v33, %v53_v36  ;;  %v115_v45 = vrot.slane %v40_v31, %v329_v5 }
  0x24   :  { %v195_v46 = vmul.f32 %v107_v37, %v54_v40  ;;  %v119_v49 = vrot.slane %v40_v31, %v334_v8  ;;  %v123_v53 = vrot.slane %v40_v31, %v338_v12  ;;  %v127_v57 = vrot.slane %v40_v31, %v342_v15 }
  0x25   :  { %v211_v30 = vadd.f32 %v210_v26, %v189_v21  ;;  %v196_v50 = vmul.f32 %v111_v41, %v55_v44  ;;  %v197_v54 = vmul.f32 %v115_v45, %v56_v48  ;;  %v131_v61 = vrot.slane %v40_v31, %v346_v20 }
  0x26   :  { %v198_v58 = vmul.f32 %v119_v49, %v57_v52  ;;  %v199_v62 = vmul.f32 %v123_v53, %v58_v56  ;;  %v135_v4 = vrot.slane %v40_v31, %v102_v24  ;;  %v200_v6 = vmul.f32 %v127_v57, %v59_v60  ;;  %v66_v31 = vld [vmem:[#allocation3 + $0xa0] sm:$0xff] }
  0x27   :  { %v212_v35 = vadd.f32 %v211_v30, %v190_v25  ;;  %v139_v10 = vrot.slane %v41_v0, %v323_v2  ;;  %v201_v11 = vmul.f32 %v131_v61, %v60_v1  ;;  %v143_v16 = vrot.slane %v41_v0, %v326_v3  ;;  %v64_v25 = vld [vmem:[#allocation3 + $0x90] sm:$0xff] }
  0x28   :  { %v202_v17 = vmul.f32 %v135_v4, %v61_v9  ;;  %v147_v21 = vrot.slane %v41_v0, %v329_v5  ;;  %v151_v24 = vrot.slane %v41_v0, %v334_v8  ;;  %v155_v2 = vrot.slane %v41_v0, %v338_v12 }
  0x29   :  { %v213_v39 = vadd.f32 %v212_v35, %v191_v29  ;;  %v203_v22 = vmul.f32 %v139_v10, %v62_v14  ;;  %v204_v26 = vmul.f32 %v143_v16, %v63_v19  ;;  %v163_v3 = vrot.slane %v41_v0, %v346_v20  ;;  %v67_v35 = vld [vmem:[#allocation3 + $0xa8] sm:$0xff] }
  0x2a   :  { %v205_v29 = vmul.f32 %v147_v21, %v64_v25  ;;  %v159_v33 = vrot.slane %v41_v0, %v342_v15  ;;  %v207_v36 = vmul.f32 %v155_v2, %v66_v31  ;;  %v236_v20 = vstv %s373_s2 }
  0x2b   :  { %v214_v43 = vadd.f32 %v213_v39, %v192_v34  ;;  %v206_v34 = vmul.f32 %v151_v24, %v65_v28 }
  0x2c   :  { %v208_v8 = vmul.f32 %v159_v33, %v67_v35 }
  0x2d   :  { %v215_v47 = vadd.f32 %v214_v43, %v193_v38  ;;  %v209_v38 = vmul.f32 %v163_v3, %v68_v32 }
  0x2f   :  { %v216_v51 = vadd.f32 %v215_v47, %v194_v42  ;;  %v232_v41 = vsel %vm231_vm0, %v209_v38, 0.0 }
  0x31   :  { %v217_v55 = vadd.f32 %v216_v51, %v195_v46 }
  0x33   :  { %v218_v59 = vadd.f32 %v217_v55, %v196_v50 }
  0x35   :  { %v219_v63 = vadd.f32 %v218_v59, %v197_v54 }
  0x37   :  { %v220_v7 = vadd.f32 %v219_v63, %v198_v58 }
  0x39   :  { %v221_v13 = vadd.f32 %v220_v7, %v199_v62 }
  0x3b   :  { %v222_v18 = vadd.f32 %v221_v13, %v200_v6 }
  0x3d   :  { %v223_v23 = vadd.f32 %v222_v18, %v201_v11 }
  0x3f   :  { %v224_v27 = vadd.f32 %v223_v23, %v202_v17 }
  0x41   :  { %v225_v30 = vadd.f32 %v224_v27, %v203_v22 }
  0x43   :  { %v226_v5 = vadd.f32 %v225_v30, %v204_v26 }
  0x45   :  { %v227_v37 = vadd.f32 %v226_v5, %v205_v29 }
  0x47   :  { %v228_v39 = vadd.f32 %v227_v37, %v206_v34 }
  0x49   :  { %v229_v40 = vadd.f32 %v228_v39, %v207_v36 }
  0x4b   :  { %v230_v12 = vadd.f32 %v229_v40, %v208_v8 }
  0x4d   :  { %v233_v42 = vadd.f32 %v232_v41, %v230_v12 }
  0x4f   :  { %234 = vadd.xlane.f32.xlu0 %v233_v42 }
  0xd8   :  { %v235_v43 = vpop.xlane.xlu0 %234 }
  0xd9   :  { %v237_v15 = vadd.f32 %v236_v20, %v235_v43 }
  0xdb   :  { %239 = vst.msk [vmem:[%s374_s3] sm:$0xff] %vm238_vm1, %v237_v15 }
  0xdc   :  { %244 = vsyncpa [#allocation4], 1 }
  0xdd   :  { %245 = vsyncpa [#allocation6], 1 }

</bundles_post_ra>
